<compile_context>
chip_gen: v5e
topology: v5e:2x2
jax: 0.10.0
libtpu: 0.0.40
codegen_flags: <defaults>
</compile_context>

<pallas_src>
import functools

import jax
import jax.numpy as jnp
from jax.experimental import pallas as pl
from jax.experimental.pallas import tpu as pltpu


# --------------------------------------------------------------------------- #
# Hardware / tiling helpers
# --------------------------------------------------------------------------- #
@functools.lru_cache(maxsize=None)
def _vmem_capacity_bytes() -> int:
    """Per-TensorCore VMEM capacity; conservative 64 MiB (v7x) fallback."""
    try:
        info = pltpu.get_tpu_info()
        for name in ("vmem_capacity_bytes", "vmem_bytes", "vmem_size_bytes"):
            v = getattr(info, name, None)
            if v:
                return int(v)
    except Exception:
        pass
    return 64 * 1024 * 1024


def _batch_block(n: int) -> int:
    """Batch sub-block: largest of {8,4,2,1} dividing n."""
    for d in (8, 4, 2, 1):
        if n % d == 0:
            return min(d, n)
    return 1


def _largest_tile(hw_padded: int, max_lanes: int) -> int:
    """Largest multiple-of-128 divisor of hw_padded that is <= max_lanes (>=128)."""
    m = hw_padded // 128
    best = 1
    d = 1
    while d * d <= m:
        if m % d == 0:
            for cand in (d, m // d):
                if 128 * cand <= max_lanes and cand > best:
                    best = cand
        d += 1
    return 128 * best


# --------------------------------------------------------------------------- #
# Kernels
# --------------------------------------------------------------------------- #
def _se_fused_kernel(x_ref, w1_ref, w2_ref, o_ref, *, inv_hw: float):
    """Whole-tensor-in-VMEM fast path: GAP + FC/ReLU/FC/sigmoid + scale."""
    y = jnp.sum(x_ref[...].astype(jnp.float32), axis=-1) * inv_hw        # (N, C)
    h = jnp.maximum(
        jnp.dot(y, w1_ref[...], preferred_element_type=jnp.float32), 0.0)
    s = jax.nn.sigmoid(
        jnp.dot(h, w2_ref[...], preferred_element_type=jnp.float32))     # (N, C)
    o_ref[...] = (x_ref[...].astype(jnp.float32) * s[:, :, None]).astype(o_ref.dtype)


def _se_gap_fc_kernel(x_ref, w1_ref, w2_ref, s_ref, *, inv_hw: float):
    """Pass 1: spatial-tiled GAP reduction with fused SE FCs in the finalize."""
    j = pl.program_id(1)

    @pl.when(j == 0)
    def _init():
        s_ref[...] = jnp.zeros_like(s_ref)

    # f32 accumulation regardless of input dtype.
    s_ref[...] += jnp.sum(x_ref[...].astype(jnp.float32), axis=-1, keepdims=True)

    @pl.when(j == pl.num_programs(1) - 1)
    def _finalize():
        y = s_ref[...][..., 0] * inv_hw                                   # (bn, C)
        h = jnp.maximum(
            jnp.dot(y, w1_ref[...], preferred_element_type=jnp.float32), 0.0)
        s = jax.nn.sigmoid(
            jnp.dot(h, w2_ref[...], preferred_element_type=jnp.float32))
        s_ref[...] = s[:, :, None]


def _se_scale_kernel(x_ref, s_ref, o_ref):
    """Pass 2: out = x * s (channel-wise scale broadcast along lanes)."""
    o_ref[...] = (x_ref[...].astype(jnp.float32) * s_ref[...]).astype(o_ref.dtype)


# --------------------------------------------------------------------------- #
# Wrapper
# --------------------------------------------------------------------------- #
def _se_layer_impl(x_nchw, w1_t, w2_t, *, force_two_pass: bool = False):
    """SELayer forward.

    x_nchw: (N, C, H, W)
    w1_t:   (C, C//r)  == Linear(C, C//r, bias=False).weight.T
    w2_t:   (C//r, C)  == Linear(C//r, C, bias=False).weight.T
    """
    N, C, H, W = x_nchw.shape
    HW = H * W
    hid = w1_t.shape[1]
    itemsize = jnp.dtype(x_nchw.dtype).itemsize
    cap = _vmem_capacity_bytes()

    x3 = x_nchw.reshape(N, C, HW)          # free reshape, HW on the lane axis
    x_bytes = N * C * HW * itemsize

    # ---------------- fused single-call fast path (x fits on chip) ----------
    if (not force_two_pass) and (2.5 * x_bytes + (4 << 20)) <= 0.7 * cap:
        out3 = pl.pallas_call(
            functools.partial(_se_fused_kernel, inv_hw=1.0 / HW),
            out_shape=jax.ShapeDtypeStruct((N, C, HW), x_nchw.dtype),
            in_specs=[pl.BlockSpec(memory_space=pltpu.MemorySpace.VMEM)] * 3,
            out_specs=pl.BlockSpec(memory_space=pltpu.MemorySpace.VMEM),
            compiler_params=pltpu.CompilerParams(
                vmem_limit_bytes=int(0.85 * cap)),
            cost_estimate=pl.CostEstimate(
                flops=2 * N * C * HW + 4 * N * C * hid,
                transcendentals=N * C,
                bytes_accessed=2 * x_bytes),
        )(x3, w1_t, w2_t)
        return out3.reshape(N, C, H, W)

    # ---------------- two-pass streaming path -------------------------------
    # Pad spatial axis to a multiple of 128 (zeros do not affect the sum).
    HWp = ((HW + 127) // 128) * 128
    if HWp != HW:
        x3 = jnp.pad(x3, ((0, 0), (0, 0), (0, HWp - HW)))

    # VMEM-budget-driven tiles (~2-4 MiB blocks), per-generation capacity.
    target = min(4 << 20, cap // 16)
    bn = _batch_block(N)
    ts1 = _largest_tile(HWp, max(128, target // max(1, bn * C * itemsize)))
    ts2 = _largest_tile(HWp, max(128, target // max(1, C * itemsize)))
    vmem_lim = int(min(cap // 2, 64 << 20))

    n_b = N // bn
    n_j1 = HWp // ts1
    n_j2 = HWp // ts2

    # Pass 1: GAP reduction (+ fused FC/ReLU/FC/sigmoid in finalize) -> (N, C, 1)
    s = pl.pallas_call(
        functools.partial(_se_gap_fc_kernel, inv_hw=1.0 / HW),
        out_shape=jax.ShapeDtypeStruct((N, C, 1), jnp.float32),
        grid_spec=pltpu.PrefetchScalarGridSpec(
            num_scalar_prefetch=0,
            grid=(n_b, n_j1),
            in_specs=[
                pl.BlockSpec((bn, C, ts1), lambda b, j: (b, 0, j)),
                pl.BlockSpec((C, hid), lambda b, j: (0, 0)),
                pl.BlockSpec((hid, C), lambda b, j: (0, 0)),
            ],
            out_specs=pl.BlockSpec((bn, C, 1), lambda b, j: (b, 0, 0)),
        ),
        compiler_params=pltpu.CompilerParams(
            dimension_semantics=("parallel", "arbitrary"),
            vmem_limit_bytes=vmem_lim),
        cost_estimate=pl.CostEstimate(
            flops=N * C * HWp + 4 * N * C * hid,
            transcendentals=N * C,
            bytes_accessed=N * C * HWp * itemsize + N * C * 4),
    )(x3, w1_t, w2_t)

    # Pass 2: channel-wise rescale, fully parallel grid.
    out3 = pl.pallas_call(
        _se_scale_kernel,
        out_shape=jax.ShapeDtypeStruct((N, C, HWp), x_nchw.dtype),
        grid_spec=pltpu.PrefetchScalarGridSpec(
            num_scalar_prefetch=0,
            grid=(N, n_j2),
            in_specs=[
                pl.BlockSpec((1, C, ts2), lambda b, j: (b, 0, j)),
                pl.BlockSpec((1, C, 1), lambda b, j: (b, 0, 0)),
            ],
            out_specs=pl.BlockSpec((1, C, ts2), lambda b, j: (b, 0, j)),
        ),
        compiler_params=pltpu.CompilerParams(
            dimension_semantics=("parallel", "parallel"),
            vmem_limit_bytes=vmem_lim),
        cost_estimate=pl.CostEstimate(
            flops=N * C * HWp,
            transcendentals=0,
            bytes_accessed=2 * N * C * HWp * itemsize + N * C * 4),
    )(x3, s)

    if HWp != HW:
        out3 = out3[:, :, :HW]
    return out3.reshape(N, C, H, W)


se_layer = jax.jit(_se_layer_impl, static_argnames=("force_two_pass",))


def _reference(x, w1_t, w2_t):
    """Pure-JAX reference matching the PyTorch SELayer forward."""
    y = jnp.mean(x, axis=(2, 3))                                   # (N, C)
    y = jax.nn.relu(jnp.dot(y, w1_t, precision=jax.lax.Precision.HIGHEST))
    s = jax.nn.sigmoid(jnp.dot(y, w2_t, precision=jax.lax.Precision.HIGHEST))
    return x * s[:, :, None, None]


if __name__ == "__main__":
    key = jax.random.PRNGKey(0)
    N, C, H, W = 2, 64, 32, 32          # channel >= reduction (=16)
    reduction = 16
    hid = C // reduction                # 4

    k1, k2, k3 = jax.random.split(key, 3)
    x = jax.random.normal(k1, (N, C, H, W), jnp.float32)
    # SE linear weights stored pre-transposed so the kernels compute y @ W.
    w1_t = 0.2 * jax.random.normal(k2, (C, hid), jnp.float32)   # Linear(C, C//r).weight.T
    w2_t = 0.2 * jax.random.normal(k3, (hid, C), jnp.float32)   # Linear(C//r, C).weight.T

    ref = jax.block_until_ready(_reference(x, w1_t, w2_t))

    # Fused fast path (selected automatically for this small shape).
    out_fused = jax.block_until_ready(se_layer(x, w1_t, w2_t))
    assert out_fused.shape == (N, C, H, W), out_fused.shape
    err_fused = float(jnp.max(jnp.abs(out_fused - ref)))
    assert jnp.allclose(out_fused, ref, atol=1e-2, rtol=1e-2), f"fused max err {err_fused}"

    # Two-pass streaming path (forced, to verify the production-shape path too).
    out_2p = jax.block_until_ready(se_layer(x, w1_t, w2_t, force_two_pass=True))
    assert out_2p.shape == (N, C, H, W), out_2p.shape
    err_2p = float(jnp.max(jnp.abs(out_2p - ref)))
    assert jnp.allclose(out_2p, ref, atol=1e-2, rtol=1e-2), f"two-pass max err {err_2p}"

    print("KERNEL_OK")
</pallas_src>

<mosaic_0001>
module attributes {stable_mosaic.version = 11 : i64} {
  func.func @_se_fused_kernel(%arg0: memref<2x64x1024xf32, #tpu.memory_space<vmem>>, %arg1: memref<64x4xf32, #tpu.memory_space<vmem>>, %arg2: memref<4x64xf32, #tpu.memory_space<vmem>>, %arg3: memref<2x64x1024xf32, #tpu.memory_space<vmem>>) attributes {dimension_semantics = [], scalar_prefetch = 0 : i64, scratch_operands = 0 : i64, tpu.core_type = #tpu.core_type<tc>} {
    %c0 = arith.constant 0 : index
    %c0_0 = arith.constant 0 : index
    %c0_1 = arith.constant 0 : index
    %0 = vector.load %arg0[%c0, %c0_0, %c0_1] : memref<2x64x1024xf32, #tpu.memory_space<vmem>>, vector<2x64x1024xf32>
    %cst = arith.constant dense<0.000000e+00> : vector<2x64xf32>
    %1 = vector.multi_reduction <add>, %0, %cst [2] : vector<2x64x1024xf32> to vector<2x64xf32>
    %cst_2 = arith.constant 9.765625E-4 : f32
    %2 = vector.broadcast %cst_2 : f32 to vector<2x64xf32>
    %3 = arith.mulf %1, %2 : vector<2x64xf32>
    %c0_3 = arith.constant 0 : index
    %c0_4 = arith.constant 0 : index
    %4 = vector.load %arg1[%c0_3, %c0_4] : memref<64x4xf32, #tpu.memory_space<vmem>>, vector<64x4xf32>
    %cst_5 = arith.constant dense<0.000000e+00> : vector<2x4xf32>
    %5 = tpu.matmul %3, %4, %cst_5 {dimension_numbers = #tpu.dot_dimension_numbers<[1], [0], [0], [1], [0, 0, 1, 1], [], []>} : vector<2x64xf32>, vector<64x4xf32>, vector<2x4xf32> -> vector<2x4xf32>
    %cst_6 = arith.constant 0.000000e+00 : f32
    %6 = vector.broadcast %cst_6 : f32 to vector<2x4xf32>
    %7 = arith.maximumf %5, %6 : vector<2x4xf32>
    %c0_7 = arith.constant 0 : index
    %c0_8 = arith.constant 0 : index
    %8 = vector.load %arg2[%c0_7, %c0_8] : memref<4x64xf32, #tpu.memory_space<vmem>>, vector<4x64xf32>
    %cst_9 = arith.constant dense<0.000000e+00> : vector<2x64xf32>
    %9 = tpu.matmul %7, %8, %cst_9 {dimension_numbers = #tpu.dot_dimension_numbers<[1], [0], [0], [1], [0, 0, 1, 1], [], []>} : vector<2x4xf32>, vector<4x64xf32>, vector<2x64xf32> -> vector<2x64xf32>
    %10 = arith.negf %9 : vector<2x64xf32>
    %11 = math.exp %10 : vector<2x64xf32>
    %cst_10 = arith.constant 1.000000e+00 : f32
    %12 = vector.broadcast %cst_10 : f32 to vector<2x64xf32>
    %13 = arith.addf %12, %11 : vector<2x64xf32>
    %14 = arith.divf %12, %13 : vector<2x64xf32>
    %c0_11 = arith.constant 0 : index
    %c0_12 = arith.constant 0 : index
    %c0_13 = arith.constant 0 : index
    %15 = vector.load %arg0[%c0_11, %c0_12, %c0_13] : memref<2x64x1024xf32, #tpu.memory_space<vmem>>, vector<2x64x1024xf32>
    %16 = vector.shape_cast %14 : vector<2x64xf32> to vector<2x64x1xf32>
    %17 = vector.broadcast %16 : vector<2x64x1xf32> to vector<2x64x1024xf32>
    %18 = arith.mulf %15, %17 : vector<2x64x1024xf32>
    %c0_14 = arith.constant 0 : index
    %c0_15 = arith.constant 0 : index
    %c0_16 = arith.constant 0 : index
    %19 = vector.load %arg3[%c0_14, %c0_15, %c0_16] : memref<2x64x1024xf32, #tpu.memory_space<vmem>>, vector<2x64x1024xf32>
    tpu.vector_store %arg3[%c0_14, %c0_15, %c0_16], %18 {strides = array<i32>} : memref<2x64x1024xf32, #tpu.memory_space<vmem>>, vector<2x64x1024xf32>,
    return
  }
}

</mosaic_0001>

<bundles_post_ra>
// kernel: _se_layer_impl.1
= control target key start
LH: loop header
LB: loop body
LE: loop exit
PB: predicated region body
PF: predicated region fallthrough
CT: control target
= control target key end

     0   :  { %vm331_vm0 = vcmask 130112   ;;  %vm335_vm1 = vcmask 195712   ;;  %vm339_vm2 = vcmask 261312   ;;  %vm343_vm3 = vcmask 326912   ;;  %s2166_s0 = inlined_call_operand.vmem [shape: f32[2,64,1024], index: 0, kind: input, shape index: {}]   ;;  %s2167_s1 = inlined_call_operand.vmem [shape: f32[64,4], index: 1, kind: input, shape index: {}]   ;;  %s2168_s2 = inlined_call_operand.vmem [shape: f32[4,64], index: 2, kind: input, shape index: {}]   ;;  %s2169_s3 = inlined_call_operand.vmem [shape: f32[2,64,1024], index: 3, kind: output, shape index: {}]  }
   0x1   :  { %v78_v0 = vld [vmem:[%s2166_s0 + $0x200] sm:$0xff]  ;;  %v79_v1 = vld [vmem:[%s2166_s0 + $0x208] sm:$0xff]  ;;  %v80_v2 = vld [vmem:[%s2166_s0 + $0x210] sm:$0xff]  ;;  %vm347_vm4 = vcmask 392512   ;;  %vm351_vm5 = vcmask 458112   ;;  %vm355_vm6 = vcmask 523712  }
   0x2   :  { %v214_v3 = vadd.f32 %v79_v1, %v78_v0  ;;  %v81_v4 = vld [vmem:[%s2166_s0 + $0x218] sm:$0xff]  ;;  %v892_v5 = vld [vmem:[%s2166_s0] sm:$0xff]  ;;  %v897_v7 = vld [vmem:[%s2166_s0 + $0x8] sm:$0xff]  ;;  %vm372_vm7 = vcmask 1041409   ;;  %vm374_vm8 = vcmask 523264   ;;  %vm403_vm9 = vcmask 1043456  }
   0x3   :  { %v902_v8 = vld [vmem:[%s2166_s0 + $0x10] sm:$0xff]  ;;  %v82_v9 = vld [vmem:[%s2166_s0 + $0x220] sm:$0xff]  ;;  %v142_v10 = vadd.f32 %v897_v7, %v892_v5  ;;  %v912_v12 = vld [vmem:[%s2166_s0 + $0x18] sm:$0xff]  ;;  %vm399_vm10 = vcmask 31744  }
   0x4   :  { %v215_v6 = vadd.f32 %v214_v3, %v80_v2  ;;  %v917_v13 = vld [vmem:[%s2166_s0 + $0x80] sm:$0xff]  ;;  %v922_v14 = vld [vmem:[%s2166_s0 + $0x88] sm:$0xff]  ;;  %v931_v17 = vld [vmem:[%s2166_s0 + $0x90] sm:$0xff] }
   0x5   :  { %v83_v15 = vld [vmem:[%s2166_s0 + $0x228] sm:$0xff]  ;;  %v143_v16 = vadd.f32 %v142_v10, %v902_v8  ;;  %v160_v18 = vadd.f32 %v922_v14, %v917_v13  ;;  %v84_v19 = vld [vmem:[%s2166_s0 + $0x230] sm:$0xff]  ;;  %v941_v21 = vld [vmem:[%s2166_s0 + $0x20] sm:$0xff] }
   0x6   :  { %v216_v11 = vadd.f32 %v215_v6, %v81_v4  ;;  %v946_v22 = vld [vmem:[%s2166_s0 + $0x98] sm:$0xff]  ;;  %v953_v25 = vld [vmem:[%s2166_s0 + $0x240] sm:$0xff]  ;;  %v958_v26 = vld [vmem:[%s2166_s0 + $0x248] sm:$0xff] }
   0x7   :  { %v144_v23 = vadd.f32 %v143_v16, %v912_v12  ;;  %v161_v24 = vadd.f32 %v160_v18, %v931_v17  ;;  %2241 = vst [vmem:[#allocation2_spill] sm:$0xff] %v953_v25  ;;  %v963_v27 = vld [vmem:[%s2166_s0 + $0x250] sm:$0xff]  ;;  %v85_v28 = vld [vmem:[%s2166_s0 + $0x238] sm:$0xff]  ;;  %v971_v30 = vld [vmem:[%s2166_s0 + $0x28] sm:$0xff]  ;;  %v223_v32 = vadd.f32 %v958_v26, %v953_v25 }
   0x8   :  { %v217_v20 = vadd.f32 %v216_v11, %v82_v9  ;;  %2242 = vst [vmem:[#allocation3_spill] sm:$0xff] %v958_v26  ;;  %v976_v31 = vld [vmem:[%s2166_s0 + $0xa0] sm:$0xff]  ;;  %v983_v33 = vld [vmem:[%s2166_s0 + $0x30] sm:$0xff]  ;;  %v990_v36 = vld [vmem:[%s2166_s0 + $0x258] sm:$0xff] }
   0x9   :  { %2243 = vst [vmem:[#allocation4_spill] sm:$0xff] %v963_v27  ;;  %v145_v34 = vadd.f32 %v144_v23, %v941_v21  ;;  %v162_v35 = vadd.f32 %v161_v24, %v946_v22  ;;  %v995_v37 = vld [vmem:[%s2166_s0 + $0x40] sm:$0xff]  ;;  %v1000_v39 = vld [vmem:[%s2166_s0 + $0xa8] sm:$0xff]  ;;  %v224_v40 = vadd.f32 %v223_v32, %v963_v27  ;;  %v1011_v42 = vld [vmem:[%s2166_s0 + $0x50] sm:$0xff] }
   0xa   :  { %v218_v29 = vadd.f32 %v217_v20, %v83_v15  ;;  %2244 = vst [vmem:[#allocation5_spill] sm:$0xff] %v983_v33  ;;  %v1006_v41 = vld [vmem:[%s2166_s0 + $0x48] sm:$0xff]  ;;  %v1016_v43 = vld [vmem:[%s2166_s0 + $0x38] sm:$0xff]  ;;  %v1022_v45 = vld [vmem:[%s2166_s0 + $0xb0] sm:$0xff] }
   0xb   :  { %2245 = vst [vmem:[#allocation6_spill] sm:$0xff] %v990_v36  ;;  %v146_v44 = vadd.f32 %v145_v34, %v971_v30  ;;  %v163_v46 = vadd.f32 %v162_v35, %v976_v31  ;;  %v1028_v47 = vld [vmem:[%s2166_s0 + $0x260] sm:$0xff]  ;;  %v151_v48 = vadd.f32 %v1006_v41, %v995_v37  ;;  %v225_v50 = vadd.f32 %v224_v40, %v990_v36  ;;  %v1036_v51 = vld [vmem:[%s2166_s0 + $0x58] sm:$0xff]  ;;  %v95_v53 = vld [vmem:[%s2166_s0 + $0x288] sm:$0xff] }
   0xc   :  { %v219_v38 = vadd.f32 %v218_v29, %v84_v19  ;;  %2246 = vst [vmem:[#allocation7_spill] sm:$0xff] %v1016_v43  ;;  %v94_v52 = vld [vmem:[%s2166_s0 + $0x280] sm:$0xff]  ;;  %v1048_v55 = vld [vmem:[%s2166_s0 + $0xb8] sm:$0xff]  ;;  %v1054_v57 = vld [vmem:[%s2166_s0 + $0x268] sm:$0xff] }
   0xd   :  { %2247 = vst [vmem:[#allocation8_spill] sm:$0xff] %v1028_v47  ;;  %v147_v54 = vadd.f32 %v146_v44, %v983_v33  ;;  %v164_v56 = vadd.f32 %v163_v46, %v1000_v39  ;;  %v152_v58 = vadd.f32 %v151_v48, %v1011_v42  ;;  %v96_v59 = vld [vmem:[%s2166_s0 + $0x290] sm:$0xff]  ;;  %v232_v60 = vadd.f32 %v95_v53, %v94_v52  ;;  %v1069_v63 = vld [vmem:[%s2166_s0 + $0x60] sm:$0xff]  ;;  %v97_v0 = vld [vmem:[%s2166_s0 + $0x298] sm:$0xff] }
   0xe   :  { %v220_v49 = vadd.f32 %v219_v38, %v85_v28  ;;  %2248 = vst [vmem:[#allocation9_spill] sm:$0xff] %v1054_v57  ;;  %v1063_v61 = vld [vmem:[%s2166_s0 + $0x270] sm:$0xff]  ;;  %v226_v62 = vadd.f32 %v225_v50, %v1028_v47  ;;  %v102_v6 = vld [vmem:[%s2166_s0 + $0x2c0] sm:$0xff]  ;;  %v103_v9 = vld [vmem:[%s2166_s0 + $0x2c8] sm:$0xff] }
   0xf   :  { %2249 = vst [vmem:[#allocation10_spill] sm:$0xff] %v1063_v61  ;;  %v148_v1 = vadd.f32 %v147_v54, %v1016_v43  ;;  %v165_v2 = vadd.f32 %v164_v56, %v1022_v45  ;;  %v153_v3 = vadd.f32 %v152_v58, %v1036_v51  ;;  %v233_v4 = vadd.f32 %v232_v60, %v96_v59  ;;  %v104_v10 = vld [vmem:[%s2166_s0 + $0x2d0] sm:$0xff]  ;;  %v1089_v11 = vld [vmem:[%s2166_s0 + $0x278] sm:$0xff]  ;;  %v1095_v16 = vld [vmem:[%s2166_s0 + $0x68] sm:$0xff] }
  0x10   :  { %221 = vadd.xlane.f32.xlu1 %v220_v49  ;;  %2250 = vst [vmem:[#allocation11_spill] sm:$0xff] %v1089_v11  ;;  %v227_v15 = vadd.f32 %v226_v62, %v1054_v57  ;;  %v98_v18 = vld [vmem:[%s2166_s0 + $0x2a0] sm:$0xff]  ;;  %v241_v19 = vadd.f32 %v103_v9, %v102_v6  ;;  %v1104_v23 = vld [vmem:[%s2166_s0 + $0x70] sm:$0xff]  ;;  %v105_v29 = vld [vmem:[%s2166_s0 + $0x2d8] sm:$0xff] }
  0x11   :  { %149 = vadd.xlane.f32.xlu0 %v148_v1  ;;  %v166_v20 = vadd.f32 %v165_v2, %v1048_v55  ;;  %v154_v24 = vadd.f32 %v153_v3, %v1069_v63  ;;  %v234_v28 = vadd.f32 %v233_v4, %v97_v0  ;;  %v1113_v32 = vld [vmem:[%s2166_s0 + $0xc0] sm:$0xff]  ;;  %v99_v35 = vld [vmem:[%s2166_s0 + $0x2a8] sm:$0xff]  ;;  %v1127_v44 = vld [vmem:[%s2166_s0 + $0xd0] sm:$0xff] }
  0x12   :  { %v228_v34 = vadd.f32 %v227_v15, %v1063_v61  ;;  %v242_v38 = vadd.f32 %v241_v19, %v104_v10  ;;  %v1122_v40 = vld [vmem:[%s2166_s0 + $0xc8] sm:$0xff]  ;;  %v1132_v46 = vld [vmem:[%s2166_s0 + $0x78] sm:$0xff]  ;;  %v100_v49 = vld [vmem:[%s2166_s0 + $0x2b0] sm:$0xff] }
  0x13   :  { %167 = vadd.xlane.f32.xlu2 %v166_v20  ;;  %v155_v48 = vadd.f32 %v154_v24, %v1095_v16  ;;  %v235_v50 = vadd.f32 %v234_v28, %v98_v18  ;;  %v106_v52 = vld [vmem:[%s2166_s0 + $0x2e0] sm:$0xff]  ;;  %v169_v53 = vadd.f32 %v1122_v40, %v1113_v32  ;;  %v1147_v58 = vld [vmem:[%s2166_s0 + $0xd8] sm:$0xff]  ;;  %v1157_v60 = vld [vmem:[%s2166_s0 + $0x108] sm:$0xff] }
  0x14   :  { %v229_v54 = vadd.f32 %v228_v34, %v1089_v11  ;;  %v243_v56 = vadd.f32 %v242_v38, %v105_v29  ;;  %v1152_v59 = vld [vmem:[%s2166_s0 + $0x100] sm:$0xff]  ;;  %2252 = vst [vmem:[#allocation13_spill] sm:$0xff] %v1157_v60  ;;  %v1163_v0 = vld [vmem:[%s2166_s0 + $0x2b8] sm:$0xff]  ;;  %v107_v2 = vld [vmem:[%s2166_s0 + $0x2e8] sm:$0xff] }
  0x15   :  { %2251 = vst [vmem:[#allocation12_spill] sm:$0xff] %v1152_v59  ;;  %v156_v62 = vadd.f32 %v155_v48, %v1104_v23  ;;  %v236_v1 = vadd.f32 %v235_v50, %v99_v35  ;;  %v170_v3 = vadd.f32 %v169_v53, %v1127_v44  ;;  %v1172_v4 = vld [vmem:[%s2166_s0 + $0x110] sm:$0xff]  ;;  %v178_v6 = vadd.f32 %v1157_v60, %v1152_v59  ;;  %v1182_v15 = vld [vmem:[%s2166_s0 + $0xe0] sm:$0xff]  ;;  %v1187_v18 = vld [vmem:[%s2166_s0 + $0x118] sm:$0xff] }
  0x16   :  { %2253 = vst [vmem:[#allocation14_spill] sm:$0xff] %v1163_v0  ;;  %v108_v9 = vld [vmem:[%s2166_s0 + $0x2f0] sm:$0xff]  ;;  %v244_v10 = vadd.f32 %v243_v56, %v106_v52  ;;  %v1195_v29 = vld [vmem:[%s2166_s0 + $0x140] sm:$0xff]  ;;  %v1200_v34 = vld [vmem:[%s2166_s0 + $0x148] sm:$0xff] }
  0x17   :  { %2254 = vst [vmem:[#allocation15_spill] sm:$0xff] %v1172_v4  ;;  %v157_v19 = vadd.f32 %v156_v62, %v1132_v46  ;;  %v237_v20 = vadd.f32 %v236_v1, %v100_v49  ;;  %v171_v24 = vadd.f32 %v170_v3, %v1147_v58  ;;  %v179_v28 = vadd.f32 %v178_v6, %v1172_v4  ;;  %v1205_v35 = vld [vmem:[%s2166_s0 + $0x150] sm:$0xff]  ;;  %v109_v38 = vld [vmem:[%s2166_s0 + $0x2f8] sm:$0xff]  ;;  %v1213_v49 = vld [vmem:[%s2166_s0 + $0xe8] sm:$0xff] }
  0x18   :  { %230 = vadd.xlane.f32.xlu1 %v229_v54  ;;  %2255 = vst [vmem:[#allocation16_spill] sm:$0xff] %v1187_v18  ;;  %v245_v48 = vadd.f32 %v244_v10, %v107_v2  ;;  %v1218_v50 = vld [vmem:[%s2166_s0 + $0x120] sm:$0xff]  ;;  %v187_v52 = vadd.f32 %v1200_v34, %v1195_v29  ;;  %v1226_v54 = vld [vmem:[%s2166_s0 + $0xf0] sm:$0xff]  ;;  %v1233_v1 = vld [vmem:[%s2166_s0 + $0x158] sm:$0xff] }
  0x19   :  { %2256 = vst [vmem:[#allocation17_spill] sm:$0xff] %v1195_v29  ;;  %158 = vadd.xlane.f32.xlu0 %v157_v19  ;;  %v238_v53 = vadd.f32 %v237_v20, %v1163_v0  ;;  %v172_v56 = vadd.f32 %v171_v24, %v1182_v15  ;;  %v180_v62 = vadd.f32 %v179_v28, %v1187_v18  ;;  %v1238_v2 = vld [vmem:[%s2166_s0 + $0x300] sm:$0xff]  ;;  %v1243_v6 = vld [vmem:[%s2166_s0 + $0x128] sm:$0xff]  ;;  %v1254_v20 = vld [vmem:[%s2166_s0 + $0x310] sm:$0xff] }
  0x1a   :  { %2257 = vst [vmem:[#allocation18_spill] sm:$0xff] %v1200_v34  ;;  %v246_v3 = vadd.f32 %v245_v48, %v108_v9  ;;  %v188_v10 = vadd.f32 %v187_v52, %v1205_v35  ;;  %v1249_v19 = vld [vmem:[%s2166_s0 + $0x308] sm:$0xff]  ;;  %v1259_v9 = vld [vmem:[%s2166_s0 + $0xf8] sm:$0xff]  ;;  %v1265_v28 = vld [vmem:[%s2166_s0 + $0x130] sm:$0xff] }
  0x1b   :  { %2258 = vst [vmem:[#allocation19_spill] sm:$0xff] %v1205_v35  ;;  %239 = vadd.xlane.f32.xlu2 %v238_v53  ;;  %v173_v24 = vadd.f32 %v172_v56, %v1213_v49  ;;  %v181_v48 = vadd.f32 %v180_v62, %v1218_v50  ;;  %v1271_v52 = vld [vmem:[%s2166_s0 + $0x160] sm:$0xff]  ;;  %v250_v53 = vadd.f32 %v1249_v19, %v1238_v2  ;;  %v1279_v56 = vld [vmem:[%s2166_s0 + $0x318] sm:$0xff]  ;;  %v1328_v59 = vld [vmem:[%s2166_s0 + $0x388] sm:$0xff] }
  0x1c   :  { %2259 = vst [vmem:[#allocation20_spill] sm:$0xff] %v1218_v50  ;;  %v247_v0 = vadd.f32 %v246_v3, %v109_v38  ;;  %v189_v18 = vadd.f32 %v188_v10, %v1233_v1  ;;  %v118_v62 = vld [vmem:[%s2166_s0 + $0x340] sm:$0xff]  ;;  %v119_v50 = vld [vmem:[%s2166_s0 + $0x348] sm:$0xff]  ;;  %v1291_v38 = vld [vmem:[%s2166_s0 + $0x138] sm:$0xff] }
  0x1d   :  { %2260 = vst [vmem:[#allocation21_spill] sm:$0xff] %v1233_v1  ;;  %v174_v4 = vadd.f32 %v173_v24, %v1226_v54  ;;  %v182_v3 = vadd.f32 %v181_v48, %v1243_v6  ;;  %v1297_v10 = vld [vmem:[%s2166_s0 + $0x168] sm:$0xff]  ;;  %v259_v60 = vadd.f32 %v119_v50, %v118_v62  ;;  %v1306_v24 = vld [vmem:[%s2166_s0 + $0x170] sm:$0xff]  ;;  %v1361_v57 = vld [vmem:[%s2166_s0 + $0x398] sm:$0xff] }
  0x1e   :  { %2261 = vst [vmem:[#allocation22_spill] sm:$0xff] %v1238_v2  ;;  %v120_v2 = vld [vmem:[%s2166_s0 + $0x350] sm:$0xff]  ;;  %v190_v48 = vadd.f32 %v189_v18, %v1271_v52  ;;  %v1323_v18 = vld [vmem:[%s2166_s0 + $0x380] sm:$0xff] }
  0x1f   :  { %2262 = vst [vmem:[#allocation23_spill] sm:$0xff] %v1243_v6  ;;  %v1312_v6 = vld [vmem:[%s2166_s0 + $0x320] sm:$0xff]  ;;  %v260_v62 = vadd.f32 %v259_v60, %v120_v2  ;;  %v1333_v11 = vld [vmem:[%s2166_s0 + $0x390] sm:$0xff]  ;;  %v1344_v2 = vld [vmem:[%s2166_s0 + $0x328] sm:$0xff] }
  0x20   :  { %2263 = vst [vmem:[#allocation24_spill] sm:$0xff] %v1249_v19  ;;  %v251_v19 = vadd.f32 %v250_v53, %v1254_v20  ;;  %248 = vadd.xlane.f32.xlu1 %v247_v0  ;;  %v121_v53 = vld [vmem:[%s2166_s0 + $0x358] sm:$0xff]  ;;  %v183_v0 = vadd.f32 %v182_v3, %v1265_v28  ;;  %v191_v60 = vadd.f32 %v190_v48, %v1297_v10 }
  0x21   :  { %2264 = vst [vmem:[#allocation25_spill] sm:$0xff] %v1254_v20  ;;  %v175_v20 = vadd.f32 %v174_v4, %v1259_v9  ;;  %v1338_v4 = vld [vmem:[%s2166_s0 + $0x178] sm:$0xff]  ;;  %v268_v3 = vadd.f32 %v1328_v59, %v1323_v18  ;;  %v261_v61 = vadd.f32 %v260_v62, %v121_v53  ;;  %v1378_v53 = vld [vmem:[%s2166_s0 + $0x188] sm:$0xff]  ;;  %v1383_v62 = vld [vmem:[%s2166_s0 + $0x190] sm:$0xff] }
  0x22   :  { %2265 = vst [vmem:[#allocation26_spill] sm:$0xff] %v1265_v28  ;;  %v252_v50 = vadd.f32 %v251_v19, %v1279_v56  ;;  %v122_v19 = vld [vmem:[%s2166_s0 + $0x360] sm:$0xff]  ;;  %v1355_v28 = vld [vmem:[%s2166_s0 + $0x330] sm:$0xff] }
  0x23   :  { %2266 = vst [vmem:[#allocation27_spill] sm:$0xff] %v1271_v52  ;;  %176 = vadd.xlane.f32.xlu0 %v175_v20  ;;  %v192_v20 = vadd.f32 %v191_v60, %v1306_v24  ;;  %v1388_v60 = vld [vmem:[%s2166_s0 + $0x338] sm:$0xff] }
  0x24   :  { %2267 = vst [vmem:[#allocation28_spill] sm:$0xff] %v1279_v56  ;;  %v184_v56 = vadd.f32 %v183_v0, %v1291_v38  ;;  %v253_v48 = vadd.f32 %v252_v50, %v1312_v6  ;;  %v1372_v0 = vld [vmem:[%s2166_s0 + $0x368] sm:$0xff]  ;;  %v269_v50 = vadd.f32 %v268_v3, %v1333_v11  ;;  %v1394_v3 = vld [vmem:[%s2166_s0 + $0x370] sm:$0xff] }
  0x25   :  { %2268 = vst [vmem:[#allocation29_spill] sm:$0xff] %v1291_v38  ;;  %v193_v38 = vadd.f32 %v192_v20, %v1338_v4  ;;  %v1424_v20 = vld [vmem:[%s2166_s0 + $0x378] sm:$0xff] }
  0x26   :  { %2269 = vst [vmem:[#allocation30_spill] sm:$0xff] %v1297_v10  ;;  %185 = vadd.xlane.f32.xlu2 %v184_v56  ;;  %v270_v47 = vadd.f32 %v269_v50, %v1361_v57 }
  0x27   :  { %2270 = vst [vmem:[#allocation31_spill] sm:$0xff] %v1306_v24 }
  0x28   :  { %2271 = vst [vmem:[#allocation32_spill] sm:$0xff] %v1312_v6  ;;  %v254_v6 = vadd.f32 %v253_v48, %v1344_v2  ;;  %v1408_v48 = vld [vmem:[%s2166_s0 + $0x198] sm:$0xff]  ;;  %194 = vadd.xlane.f32.xlu1 %v193_v38 }
  0x29   :  { %2272 = vst [vmem:[#allocation33_spill] sm:$0xff] %v1323_v18  ;;  %v1399_v18 = vld [vmem:[%s2166_s0 + $0x3a0] sm:$0xff] }
  0x2a   :  { %2273 = vst [vmem:[#allocation34_spill] sm:$0xff] %v1328_v59  ;;  %v1366_v59 = vld [vmem:[%s2166_s0 + $0x180] sm:$0xff] }
  0x2b   :  { %2274 = vst [vmem:[#allocation35_spill] sm:$0xff] %v1333_v11  ;;  %v262_v11 = vadd.f32 %v261_v61, %v122_v19  ;;  %v196_v56 = vadd.f32 %v1378_v53, %v1366_v59  ;;  %v1413_v61 = vld [vmem:[%s2166_s0 + $0x1c0] sm:$0xff]  ;;  %v1418_v19 = vld [vmem:[%s2166_s0 + $0x1c8] sm:$0xff] }
  0x2c   :  { %2275 = vst [vmem:[#allocation36_spill] sm:$0xff] %v1338_v4 }
  0x2d   :  { %2276 = vst [vmem:[#allocation37_spill] sm:$0xff] %v1344_v2  ;;  %v255_v2 = vadd.f32 %v254_v6, %v1355_v28  ;;  %v263_v50 = vadd.f32 %v262_v11, %v1372_v0  ;;  %v205_v6 = vadd.f32 %v1418_v19, %v1413_v61  ;;  %v1443_v11 = vld [vmem:[%s2166_s0 + $0x3b0] sm:$0xff] }
  0x2e   :  { %2277 = vst [vmem:[#allocation38_spill] sm:$0xff] %v1355_v28  ;;  %v1454_v28 = vld [vmem:[%s2166_s0 + $0x1d8] sm:$0xff] }
  0x2f   :  { %2278 = vst [vmem:[#allocation39_spill] sm:$0xff] %v1361_v57  ;;  %v1436_v57 = vld [vmem:[%s2166_s0 + $0x1d0] sm:$0xff]  ;;  %v264_v38 = vadd.f32 %v263_v50, %v1394_v3 }
  0x30   :  { %2279 = vst [vmem:[#allocation40_spill] sm:$0xff] %v1366_v59  ;;  %v197_v59 = vadd.f32 %v196_v56, %v1383_v62  ;;  %v1449_v56 = vld [vmem:[%s2166_s0 + $0x1a0] sm:$0xff] }
  0x31   :  { %2280 = vst [vmem:[#allocation41_spill] sm:$0xff] %v1372_v0  ;;  %v271_v0 = vadd.f32 %v270_v47, %v1399_v18  ;;  %v1463_v47 = vld [vmem:[%s2166_s0 + $0x3c0] sm:$0xff] }
  0x32   :  { %2281 = vst [vmem:[#allocation42_spill] sm:$0xff] %v1378_v53  ;;  %v1430_v53 = vld [vmem:[%s2166_s0 + $0x3a8] sm:$0xff] }
  0x33   :  { %2282 = vst [vmem:[#allocation43_spill] sm:$0xff] %v1383_v62  ;;  %v256_v62 = vadd.f32 %v255_v2, %v1388_v60  ;;  %v1473_v2 = vld [vmem:[%s2166_s0 + $0x3d0] sm:$0xff]  ;;  %v272_v50 = vadd.f32 %v271_v0, %v1430_v53  ;;  %v1492_v0 = vld [vmem:[%s2166_s0 + $0x3b8] sm:$0xff] }
  0x34   :  { %2283 = vst [vmem:[#allocation44_spill] sm:$0xff] %v1388_v60  ;;  %v265_v60 = vadd.f32 %v264_v38, %v1424_v20  ;;  %v1510_v38 = vld [vmem:[%s2166_s0 + $0x1e8] sm:$0xff] }
  0x35   :  { %2284 = vst [vmem:[#allocation45_spill] sm:$0xff] %v1394_v3  ;;  %257 = vadd.xlane.f32.xlu0 %v256_v62  ;;  %v273_v36 = vadd.f32 %v272_v50, %v1443_v11  ;;  %v1505_v62 = vld [vmem:[%s2166_s0 + $0x1b0] sm:$0xff]  ;;  %v1518_v50 = vld [vmem:[%s2166_s0 + $0x3e0] sm:$0xff] }
  0x36   :  { %2285 = vst [vmem:[#allocation46_spill] sm:$0xff] %v1399_v18  ;;  %v1468_v18 = vld [vmem:[%s2166_s0 + $0x3c8] sm:$0xff]  ;;  %266 = vadd.xlane.f32.xlu2 %v265_v60  ;;  %v1529_v60 = vld [vmem:[%s2166_s0 + $0x1f0] sm:$0xff] }
  0x37   :  { %2286 = vst [vmem:[#allocation47_spill] sm:$0xff] %v1408_v48  ;;  %v277_v3 = vadd.f32 %v1468_v18, %v1463_v47 }
  0x38   :  { %2287 = vst [vmem:[#allocation48_spill] sm:$0xff] %v1413_v61  ;;  %v206_v61 = vadd.f32 %v205_v6, %v1436_v57  ;;  %v1484_v6 = vld [vmem:[%s2166_s0 + $0x1e0] sm:$0xff] }
  0x39   :  { %2288 = vst [vmem:[#allocation49_spill] sm:$0xff] %v1418_v19  ;;  %v198_v19 = vadd.f32 %v197_v59, %v1408_v48  ;;  %v1479_v59 = vld [vmem:[%s2166_s0 + $0x1a8] sm:$0xff] }
  0x3a   :  { %2289 = vst [vmem:[#allocation50_spill] sm:$0xff] %v1424_v20 }
  0x3b   :  { %2290 = vst [vmem:[#allocation51_spill] sm:$0xff] %v1430_v53  ;;  %v199_v48 = vadd.f32 %v198_v19, %v1449_v56  ;;  %v207_v53 = vadd.f32 %v206_v61, %v1454_v28  ;;  %v278_v19 = vadd.f32 %v277_v3, %v1473_v2 }
  0x3c   :  { %2291 = vst [vmem:[#allocation52_spill] sm:$0xff] %v1436_v57  ;;  %v1499_v57 = vld [vmem:[%s2166_s0 + $0x3d8] sm:$0xff] }
  0x3d   :  { %2292 = vst [vmem:[#allocation53_spill] sm:$0xff] %v1443_v11  ;;  %v200_v61 = vadd.f32 %v199_v48, %v1479_v59  ;;  %v208_v20 = vadd.f32 %v207_v53, %v1484_v6  ;;  %v279_v3 = vadd.f32 %v278_v19, %v1499_v57 }
  0x3e   :  { %2293 = vst [vmem:[#allocation54_spill] sm:$0xff] %v1449_v56 }
  0x3f   :  { %2294 = vst [vmem:[#allocation55_spill] sm:$0xff] %v1454_v28  ;;  %v201_v53 = vadd.f32 %v200_v61, %v1505_v62  ;;  %v209_v48 = vadd.f32 %v208_v20, %v1510_v38  ;;  %v1550_v20 = vld [vmem:[%s2166_s0 + $0x3f0] sm:$0xff] }
  0x40   :  { %2295 = vst [vmem:[#allocation56_spill] sm:$0xff] %v1463_v47  ;;  %v1524_v47 = vld [vmem:[%s2166_s0 + $0x1b8] sm:$0xff] }
  0x41   :  { %2296 = vst [vmem:[#allocation57_spill] sm:$0xff] %v1468_v18  ;;  %v274_v18 = vadd.f32 %v273_v36, %v1492_v0  ;;  %v1537_v36 = vld [vmem:[%s2166_s0 + $0x3e8] sm:$0xff]  ;;  %v202_v56 = vadd.f32 %v201_v53, %v1524_v47  ;;  %v210_v19 = vadd.f32 %v209_v48, %v1529_v60 }
  0x42   :  { %2297 = vst [vmem:[#allocation58_spill] sm:$0xff] %v1473_v2  ;;  %v1542_v2 = vld [vmem:[%s2166_s0 + $0x1f8] sm:$0xff] }
  0x43   :  { %2298 = vst [vmem:[#allocation59_spill] sm:$0xff] %v1479_v59  ;;  %275 = vadd.xlane.f32.xlu1 %v274_v18  ;;  %v280_v59 = vadd.f32 %v279_v3, %v1518_v50  ;;  %203 = vadd.xlane.f32.xlu0 %v202_v56  ;;  %v211_v18 = vadd.f32 %v210_v19, %v1542_v2  ;;  %v308_v19 = vld [vmem:[%s2167_s1 + $0x30] sm:$0xff] }
  0x44   :  { %2299 = vst [vmem:[#allocation60_spill] sm:$0xff] %v1484_v6 }
  0x45   :  { %2300 = vst [vmem:[#allocation61_spill] sm:$0xff] %v1492_v0  ;;  %v281_v61 = vadd.f32 %v280_v59, %v1537_v36  ;;  %212 = vadd.xlane.f32.xlu2 %v211_v18 }
  0x46   :  { %2301 = vst [vmem:[#allocation62_spill] sm:$0xff] %v1499_v57  ;;  %v1557_v57 = vld [vmem:[%s2166_s0 + $0x3f8] sm:$0xff] }
  0x47   :  { %2302 = vst [vmem:[#allocation63_spill] sm:$0xff] %v1505_v62  ;;  %v282_v3 = vadd.f32 %v281_v61, %v1550_v20  ;;  %v307_v61 = vld [vmem:[%s2167_s1 + $0x28] sm:$0xff] }
  0x48   :  { %2303 = vst [vmem:[#allocation64_spill] sm:$0xff] %v1510_v38 }
  0x49   :  { %2304 = vst [vmem:[#allocation65_spill] sm:$0xff] %v1518_v50  ;;  %v283_v53 = vadd.f32 %v282_v3, %v1557_v57  ;;  %v309_v50 = vld [vmem:[%s2167_s1 + $0x38] sm:$0xff]  ;;  %v306_v3 = vld [vmem:[%s2167_s1 + $0x20] sm:$0xff] }
  0x4a   :  { %2305 = vst [vmem:[#allocation66_spill] sm:$0xff] %v1524_v47  ;;  %385 = vmatpush.msra.mxu0 %v309_v50  ;;  %v305_v50 = vld [vmem:[%s2167_s1 + $0x18] sm:$0xff] }
  0x4b   :  { %2306 = vst [vmem:[#allocation67_spill] sm:$0xff] %v1529_v60  ;;  %284 = vadd.xlane.f32.xlu0 %v283_v53 }
  0x4c   :  { %2307 = vst [vmem:[#allocation68_spill] sm:$0xff] %v1537_v36  ;;  %386 = vmatpush.msra.mxu0 %v308_v19  ;;  %v304_v19 = vld [vmem:[%s2167_s1 + $0x10] sm:$0xff] }
  0x4d   :  { %2308 = vst [vmem:[#allocation69_spill] sm:$0xff] %v1542_v2 }
  0x4e   :  { %2309 = vst [vmem:[#allocation70_spill] sm:$0xff] %v1550_v20  ;;  %387 = vmatpush.msra.mxu0 %v307_v61  ;;  %v303_v61 = vld [vmem:[%s2167_s1 + $0x8] sm:$0xff]  ;;  %v302_v20 = vld [vmem:[%s2167_s1] sm:$0xff] }
  0x4f   :  { %2310 = vst [vmem:[#allocation71_spill] sm:$0xff] %v1557_v57 }
  0x50   :  { %388 = vmatpush.msra.mxu0 %v306_v3 }
  0x52   :  { %389 = vmatpush.msra.mxu0 %v305_v50  ;;  %v2234_v50 = vlaneseq }
  0x54   :  { %390 = vmatpush.msra.mxu0 %v304_v19  ;;  %v327_v62 = vand.u32 127, %v2234_v50 }
  0x56   :  { %391 = vmatpush.msra.mxu0 %v303_v61  ;;  %v329_v2 = vadd.s32 4294967288, %v327_v62  ;;  %v333_v27 = vadd.s32 4294967280, %v327_v62  ;;  %v337_v4 = vadd.s32 4294967272, %v327_v62  ;;  %v341_v35 = vadd.s32 4294967264, %v327_v62 }
  0x58   :  { %392 = vmatpush.msra.mxu0 %v302_v20 }
  0x83   :  { %v222_v48 = vpop.xlane.xlu1 %221 }
  0x84   :  { %v150_v59 = vpop.xlane.xlu0 %149  ;;  %v294_v38 = vmul.f32 0.0009765625, %v222_v48 }
  0x85   :  { %v286_v6 = vmul.f32 0.0009765625, %v150_v59 }
  0x86   :  { %v168_v56 = vpop.xlane.xlu2 %167  ;;  %v357_v61 = vperm.slane %v294_v38, %v327_v62 }
  0x87   :  { %v288_v26 = vmul.f32 0.0009765625, %v168_v56  ;;  %v328_v10 = vperm.slane %v286_v6, %v327_v62 }
  0x89   :  { %v334_v1 = vperm.slane %v288_v26, %v333_v27 }
  0x8b   :  { %v231_v18 = vpop.xlane.xlu1 %230 }
  0x8c   :  { %v159_v53 = vpop.xlane.xlu0 %158  ;;  %v295_v28 = vmul.f32 0.0009765625, %v231_v18  ;;  %v345_v18 = vadd.s32 4294967256, %v327_v62 }
  0x8d   :  { %v287_v19 = vmul.f32 0.0009765625, %v159_v53 }
  0x8e   :  { %v240_v57 = vpop.xlane.xlu2 %239  ;;  %v358_v52 = vperm.slane %v295_v28, %v329_v2 }
  0x8f   :  { %v330_v25 = vperm.slane %v287_v19, %v329_v2  ;;  %v296_v20 = vmul.f32 0.0009765625, %v240_v57 }
  0x90   :  { %v359_v6 = vsel %vm331_vm0, %v358_v52, %v357_v61 }
  0x91   :  { %v332_v48 = vsel %vm331_vm0, %v330_v25, %v328_v10  ;;  %v360_v43 = vperm.slane %v296_v20, %v333_v27 }
  0x93   :  { %v249_v36 = vpop.xlane.xlu1 %248  ;;  %v361_v27 = vsel %vm335_vm1, %v360_v43, %v359_v6 }
  0x94   :  { %v297_v50 = vmul.f32 0.0009765625, %v249_v36 }
  0x96   :  { %v177_v3 = vpop.xlane.xlu0 %176  ;;  %v362_v28 = vperm.slane %v297_v50, %v337_v4 }
  0x97   :  { %v289_v24 = vmul.f32 0.0009765625, %v177_v3  ;;  %v349_v3 = vadd.s32 4294967248, %v327_v62 }
  0x98   :  { %v363_v36 = vsel %vm339_vm2, %v362_v28, %v361_v27 }
  0x99   :  { %v186_v47 = vpop.xlane.xlu2 %185  ;;  %v338_v59 = vperm.slane %v289_v24, %v337_v4  ;;  %v353_v24 = vadd.s32 4294967240, %v327_v62 }
  0x9a   :  { %v290_v34 = vmul.f32 0.0009765625, %v186_v47  ;;  %v336_v47 = vsel %vm335_vm1, %v334_v1, %v332_v48 }
  0x9b   :  { %v195_v0 = vpop.xlane.xlu1 %194  ;;  %v340_v25 = vsel %vm339_vm2, %v338_v59, %v336_v47 }
  0x9c   :  { %v291_v56 = vmul.f32 0.0009765625, %v195_v0 }
  0x9e   :  { %v346_v10 = vperm.slane %v291_v56, %v345_v18 }
  0xa8   :  { %v258_v11 = vpop.xlane.xlu0 %257 }
  0xa9   :  { %v267_v60 = vpop.xlane.xlu2 %266  ;;  %v298_v53 = vmul.f32 0.0009765625, %v258_v11  ;;  %v342_v11 = vperm.slane %v290_v34, %v341_v35 }
  0xaa   :  { %v299_v26 = vmul.f32 0.0009765625, %v267_v60 }
  0xab   :  { %v364_v2 = vperm.slane %v298_v53, %v341_v35  ;;  %v344_v4 = vsel %vm343_vm3, %v342_v11, %v340_v25 }
  0xac   :  { %v366_v52 = vperm.slane %v299_v26, %v345_v18  ;;  %v348_v60 = vsel %vm347_vm4, %v346_v10, %v344_v4  ;;  %v398_v18 = vld [vmem:[%s2168_s2] sm:$0xf] }
  0xad   :  { %v365_v1 = vsel %vm343_vm3, %v364_v2, %v363_v36  ;;  %805 = vmatpush.msk.msra.mxu1 %vm403_vm9, %v398_v18 }
  0xae   :  { %v367_v62 = vsel %vm347_vm4, %v366_v52, %v365_v1 }
  0xb6   :  { %v204_v29 = vpop.xlane.xlu0 %203  ;;  %v276_v19 = vpop.xlane.xlu1 %275 }
  0xb7   :  { %v292_v33 = vmul.f32 0.0009765625, %v204_v29  ;;  %v300_v38 = vmul.f32 0.0009765625, %v276_v19 }
  0xb8   :  { %v213_v57 = vpop.xlane.xlu2 %212 }
  0xb9   :  { %v293_v0 = vmul.f32 0.0009765625, %v213_v57  ;;  %v350_v29 = vperm.slane %v292_v33, %v349_v3  ;;  %v368_v34 = vperm.slane %v300_v38, %v349_v3  ;;  %v2311_v3 = vlaneseq }
  0xbb   :  { %v354_v50 = vperm.slane %v293_v0, %v353_v24  ;;  %v352_v61 = vsel %vm351_vm5, %v350_v29, %v348_v60  ;;  %v369_v43 = vsel %vm351_vm5, %v368_v34, %v367_v62  ;;  %v448_v57 = vshrl.u32 %v2311_v3, 7 }
  0xbd   :  { %v356_v33 = vsel %vm355_vm6, %v354_v50, %v352_v61  ;;  %808 = vset.pattern.permute.xlu1 %v448_v57  ;;  %v461_v6 = vadd.s32 16, %v448_v57  ;;  %v455_v28 = vadd.s32 8, %v448_v57  ;;  %v467_v34 = vadd.s32 24, %v448_v57 }
  0xbe   :  { %v285_v35 = vpop.xlane.xlu0 %284  ;;  %v485_v50 = vadd.s32 48, %v448_v57  ;;  %v491_v61 = vadd.s32 56, %v448_v57 }
  0xbf   :  { %v301_v20 = vmul.f32 0.0009765625, %v285_v35  ;;  %810 = vset.pattern.permute.xlu0 %v461_v6  ;;  %809 = vset.pattern.permute.xlu2 %v455_v28  ;;  %v473_v35 = vadd.s32 32, %v448_v57 }
  0xc1   :  { %v370_v53 = vperm.slane %v301_v20, %v353_v24  ;;  %v479_v20 = vadd.s32 40, %v448_v57 }
  0xc3   :  { %v371_v48 = vsel %vm355_vm6, %v370_v53, %v369_v43 }
  0xc4   :  { %v373_v59 = vsel %vm372_vm7, %v371_v48, %v356_v33 }
  0xc5   :  { %804 = vmatmul.msk.f32.vlgmr.msra.gmra.mxu0 %vm374_vm8, %v373_v59 }
 0x142   :  { %v394_v56 = vpop.f32.mrf.mxu0 }
 0x143   :  { %v397_v19 = vmax.f32 %v394_v56, 0.0 }
 0x145   :  { %806 = vmatmul.msk.f32.vlgmr.msra.gmra.mxu1 %vm399_vm10, %v397_v19 }
 0x1c2   :  { %v424_v26 = vpop.f32.mrf.mxu1 }
 0x1c3   :  { %v807_v47 = vmul.f32 -1.442695, %v424_v26  ;;  %v2316_v26 = vld [vmem:[#allocation19_spill] sm:$0xff] }
 0x1c5   :  { %825 = vpow2.f32 %v807_v47 }
 0x1cb   :  { %v826_v11 = vpop.eup %825 }
 0x1cc   :  { %v430_v2 = vadd.f32 1.0, %v826_v11  ;;  %v2317_v11 = vld [vmem:[#allocation21_spill] sm:$0xff] }
 0x1ce   :  { %827 = vrcp.f32 %v430_v2  ;;  %v442_v24 = vand.u32 2147483648, %v430_v2  ;;  %v440_v27 = vand.u32 2147483647, %v430_v2  ;;  %vm436_vm12 = vweird.f32 %v430_v2 }
 0x1d0   :  { %v443_v36 = vor.u32 1.1754944e-38, %v442_v24  ;;  %vm441_vm14 = vcmp.eq.f32.partialorder %v440_v27, 8.507059e+37  ;;  %v2320_v27 = vld [vmem:[#allocation31_spill] sm:$0xff] }
 0x1d4   :  { %v828_v38 = vpop.eup %827 }
 0x1d5   :  { %v432_v25 = vmul.f32 %v828_v38, %v430_v2  ;;  %vm437_vm11 = vweird.f32 %v828_v38 }
 0x1d6   :  { %vm438_vm13 = vmor %vm436_vm12, %vm437_vm11 }
 0x1d7   :  { %v433_v10 = vsub.f32 1.0, %v432_v25 }
 0x1d9   :  { %v434_v0 = vmul.f32 %v828_v38, %v433_v10  ;;  %v2319_v10 = vld [vmem:[#allocation30_spill] sm:$0xff] }
 0x1db   :  { %v435_v29 = vadd.f32 %v828_v38, %v434_v0 }
 0x1dd   :  { %v439_v52 = vsel %vm438_vm13, %v828_v38, %v435_v29  ;;  %v2318_v38 = vld [vmem:[#allocation27_spill] sm:$0xff] }
 0x1de   :  { %v444_v4 = vsel %vm441_vm14, %v443_v36, %v439_v52  ;;  %v2321_v36 = vld [vmem:[#allocation36_spill] sm:$0xff] }
 0x1df   :  { %v446_v1 = vperm.slane %v444_v4, 0  ;;  %v495_v60 = vperm.slane %v444_v4, 1  ;;  %v2322_v4 = vld [vmem:[#allocation2_spill] sm:$0xff] }
 0x1e1   :  { %463 = vperm.xlu0 %810, %v446_v1   ;;  %457 = vperm.xlu2 %809, %v446_v1  }
 0x1e2   :  { %451 = vperm.xlu1 %808, %v446_v1  }
 0x1e9   :  { %817 = vset.pattern.permute.xlu0 %v455_v28  ;;  %811 = vset.pattern.permute.xlu2 %v467_v34 }
 0x1ea   :  { %812 = vset.pattern.permute.xlu1 %v473_v35 }
 0x1f1   :  { %506 = vperm.xlu0 %817, %v495_v60   ;;  %469 = vperm.xlu2 %811, %v446_v1  }
 0x1f2   :  { %475 = vperm.xlu1 %812, %v446_v1  }
 0x1f9   :  { %822 = vset.pattern.permute.xlu0 %v485_v50  ;;  %813 = vset.pattern.permute.xlu2 %v479_v20 }
 0x1fa   :  { %814 = vset.pattern.permute.xlu1 %v485_v50 }
 0x201   :  { %536 = vperm.xlu0 %822, %v495_v60   ;;  %481 = vperm.xlu2 %813, %v446_v1  }
 0x202   :  { %487 = vperm.xlu1 %814, %v446_v1  }
 0x209   :  { %815 = vset.pattern.permute.xlu2 %v491_v61  ;;  %824 = vset.pattern.permute.xlu0 %v491_v61 }
 0x20a   :  { %816 = vset.pattern.permute.xlu1 %v448_v57 }
 0x211   :  { %493 = vperm.xlu2 %815, %v446_v1  }
 0x212   :  { %500 = vperm.xlu1 %816, %v495_v60  }
 0x219   :  { %818 = vset.pattern.permute.xlu2 %v461_v6  ;;  %v2315_v6 = vld [vmem:[#allocation18_spill] sm:$0xff] }
 0x21a   :  { %819 = vset.pattern.permute.xlu1 %v467_v34  ;;  %v2323_v34 = vld [vmem:[#allocation3_spill] sm:$0xff] }
 0x221   :  { %512 = vperm.xlu2 %818, %v495_v60  }
 0x222   :  { %518 = vperm.xlu1 %819, %v495_v60  }
 0x229   :  { %820 = vset.pattern.permute.xlu2 %v473_v35 }
 0x22a   :  { %821 = vset.pattern.permute.xlu1 %v479_v20  ;;  %v2325_v20 = vld [vmem:[#allocation6_spill] sm:$0xff] }
 0x231   :  { %524 = vperm.xlu2 %820, %v495_v60  }
 0x232   :  { %530 = vperm.xlu1 %821, %v495_v60  }
 0x239   :  { %823 = vset.pattern.permute.xlu2 %v491_v61 }
 0x23b   :  { %v458_v62 = vpop.permute.xlu2 %457 }
 0x23c   :  { %v552_v53 = vmul.f32 %v458_v62, %v995_v37  ;;  %v553_v43 = vmul.f32 %v458_v62, %v1006_v41  ;;  %v554_v33 = vmul.f32 %v458_v62, %v1011_v42  ;;  %v555_v48 = vmul.f32 %v458_v62, %v1036_v51 }
 0x23d   :  { %v556_v59 = vmul.f32 %v458_v62, %v1069_v63  ;;  %v557_v18 = vmul.f32 %v458_v62, %v1095_v16  ;;  %v558_v37 = vmul.f32 %v458_v62, %v1104_v23  ;;  %v559_v41 = vmul.f32 %v458_v62, %v1132_v46  ;;  %v2326_v62 = vld [vmem:[#allocation8_spill] sm:$0xff] }
 0x23e   :  { %680 = vst [vmem:[%s2169_s3 + $0x40] sm:$0xff] %v552_v53 }
 0x23f   :  { %681 = vst [vmem:[%s2169_s3 + $0x48] sm:$0xff] %v553_v43  ;;  %v2327_v43 = vld [vmem:[#allocation9_spill] sm:$0xff] }
 0x240   :  { %682 = vst [vmem:[%s2169_s3 + $0x50] sm:$0xff] %v554_v33 }
 0x241   :  { %683 = vst [vmem:[%s2169_s3 + $0x58] sm:$0xff] %v555_v48  ;;  %542 = vperm.xlu2 %823, %v495_v60   ;;  %v2324_v60 = vld [vmem:[#allocation4_spill] sm:$0xff] }
 0x242   :  { %684 = vst [vmem:[%s2169_s3 + $0x60] sm:$0xff] %v556_v59  ;;  %v2328_v59 = vld [vmem:[#allocation10_spill] sm:$0xff] }
 0x243   :  { %685 = vst [vmem:[%s2169_s3 + $0x68] sm:$0xff] %v557_v18 }
 0x244   :  { %686 = vst [vmem:[%s2169_s3 + $0x70] sm:$0xff] %v558_v37  ;;  %v2329_v37 = vld [vmem:[#allocation11_spill] sm:$0xff] }
 0x245   :  { %687 = vst [vmem:[%s2169_s3 + $0x78] sm:$0xff] %v559_v41 }
 0x24b   :  { %v470_v42 = vpop.permute.xlu2 %469 }
 0x24c   :  { %v568_v51 = vmul.f32 %v470_v42, %v1113_v32  ;;  %v569_v63 = vmul.f32 %v470_v42, %v1122_v40  ;;  %v570_v16 = vmul.f32 %v470_v42, %v1127_v44  ;;  %v571_v23 = vmul.f32 %v470_v42, %v1147_v58 }
 0x24d   :  { %v572_v46 = vmul.f32 %v470_v42, %v1182_v15  ;;  %v573_v56 = vmul.f32 %v470_v42, %v1213_v49  ;;  %v574_v32 = vmul.f32 %v470_v42, %v1226_v54  ;;  %v575_v40 = vmul.f32 %v470_v42, %v1259_v9  ;;  %v2330_v42 = vld [vmem:[#allocation12_spill] sm:$0xff] }
 0x24e   :  { %696 = vst [vmem:[%s2169_s3 + $0xc0] sm:$0xff] %v568_v51 }
 0x24f   :  { %697 = vst [vmem:[%s2169_s3 + $0xc8] sm:$0xff] %v569_v63  ;;  %v2331_v63 = vld [vmem:[#allocation13_spill] sm:$0xff] }
 0x250   :  { %698 = vst [vmem:[%s2169_s3 + $0xd0] sm:$0xff] %v570_v16 }
 0x251   :  { %699 = vst [vmem:[%s2169_s3 + $0xd8] sm:$0xff] %v571_v23  ;;  %v2332_v23 = vld [vmem:[#allocation15_spill] sm:$0xff] }
 0x252   :  { %700 = vst [vmem:[%s2169_s3 + $0xe0] sm:$0xff] %v572_v46 }
 0x253   :  { %701 = vst [vmem:[%s2169_s3 + $0xe8] sm:$0xff] %v573_v56  ;;  %v464_v44 = vpop.permute.xlu0 %463  ;;  %v2333_v56 = vld [vmem:[#allocation16_spill] sm:$0xff] }
 0x254   :  { %702 = vst [vmem:[%s2169_s3 + $0xf0] sm:$0xff] %v574_v32  ;;  %v560_v58 = vmul.f32 %v464_v44, %v917_v13  ;;  %v561_v15 = vmul.f32 %v464_v44, %v922_v14  ;;  %v562_v49 = vmul.f32 %v464_v44, %v931_v17  ;;  %v563_v54 = vmul.f32 %v464_v44, %v946_v22  ;;  %v452_v13 = vpop.permute.xlu1 %451 }
 0x255   :  { %703 = vst [vmem:[%s2169_s3 + $0xf8] sm:$0xff] %v575_v40  ;;  %v564_v9 = vmul.f32 %v464_v44, %v976_v31  ;;  %v565_v19 = vmul.f32 %v464_v44, %v1000_v39  ;;  %v566_v14 = vmul.f32 %v464_v44, %v1022_v45  ;;  %v567_v17 = vmul.f32 %v464_v44, %v1048_v55  ;;  %v2334_v40 = vld [vmem:[#allocation20_spill] sm:$0xff] }
 0x256   :  { %688 = vst [vmem:[%s2169_s3 + $0x80] sm:$0xff] %v560_v58  ;;  %v544_v22 = vmul.f32 %v452_v13, %v892_v5  ;;  %v545_v31 = vmul.f32 %v452_v13, %v897_v7  ;;  %v546_v39 = vmul.f32 %v452_v13, %v902_v8  ;;  %v547_v45 = vmul.f32 %v452_v13, %v912_v12  ;;  %v2312_v8 = vld [vmem:[#allocation5_spill] sm:$0xff]  ;;  %v2313_v12 = vld [vmem:[#allocation7_spill] sm:$0xff] }
 0x257   :  { %689 = vst [vmem:[%s2169_s3 + $0x88] sm:$0xff] %v561_v15  ;;  %v548_v5 = vmul.f32 %v452_v13, %v941_v21  ;;  %v549_v7 = vmul.f32 %v452_v13, %v971_v30  ;;  %v550_v3 = vmul.f32 %v452_v13, %v2312_v8  ;;  %v551_v57 = vmul.f32 %v452_v13, %v2313_v12  ;;  %v2314_v21 = vld [vmem:[#allocation17_spill] sm:$0xff]  ;;  %v2335_v58 = vld [vmem:[#allocation23_spill] sm:$0xff] }
 0x258   :  { %690 = vst [vmem:[%s2169_s3 + $0x90] sm:$0xff] %v562_v49 }
 0x259   :  { %691 = vst [vmem:[%s2169_s3 + $0x98] sm:$0xff] %v563_v54  ;;  %v2336_v54 = vld [vmem:[#allocation26_spill] sm:$0xff] }
 0x25a   :  { %692 = vst [vmem:[%s2169_s3 + $0xa0] sm:$0xff] %v564_v9 }
 0x25b   :  { %693 = vst [vmem:[%s2169_s3 + $0xa8] sm:$0xff] %v565_v19  ;;  %v482_v55 = vpop.permute.xlu2 %481  ;;  %v2337_v19 = vld [vmem:[#allocation29_spill] sm:$0xff] }
 0x25c   :  { %694 = vst [vmem:[%s2169_s3 + $0xb0] sm:$0xff] %v566_v14  ;;  %v584_v30 = vmul.f32 %v482_v55, %v2314_v21  ;;  %v585_v28 = vmul.f32 %v482_v55, %v2315_v6  ;;  %v586_v47 = vmul.f32 %v482_v55, %v2316_v26  ;;  %v587_v2 = vmul.f32 %v482_v55, %v2317_v11  ;;  %v2338_v14 = vld [vmem:[#allocation48_spill] sm:$0xff]  ;;  %v2344_v21 = vld [vmem:[#allocation67_spill] sm:$0xff]  ;;  %v2345_v6 = vld [vmem:[#allocation69_spill] sm:$0xff] }
 0x25d   :  { %695 = vst [vmem:[%s2169_s3 + $0xb8] sm:$0xff] %v567_v17  ;;  %v588_v25 = vmul.f32 %v482_v55, %v2318_v38  ;;  %v589_v24 = vmul.f32 %v482_v55, %v2319_v10  ;;  %v590_v29 = vmul.f32 %v482_v55, %v2320_v27  ;;  %v591_v52 = vmul.f32 %v482_v55, %v2321_v36  ;;  %v2342_v55 = vld [vmem:[#allocation60_spill] sm:$0xff]  ;;  %v2346_v26 = vld [vmem:[#allocation33_spill] sm:$0xff]  ;;  %v2347_v11 = vld [vmem:[#allocation34_spill] sm:$0xff] }
 0x25e   :  { %672 = vst [vmem:[%s2169_s3] sm:$0xff] %v544_v22  ;;  %v2339_v22 = vld [vmem:[#allocation49_spill] sm:$0xff]  ;;  %v2348_v38 = vld [vmem:[#allocation35_spill] sm:$0xff] }
 0x25f   :  { %673 = vst [vmem:[%s2169_s3 + $0x8] sm:$0xff] %v545_v31  ;;  %v2349_v10 = vld [vmem:[#allocation39_spill] sm:$0xff] }
 0x260   :  { %674 = vst [vmem:[%s2169_s3 + $0x10] sm:$0xff] %v546_v39  ;;  %v2340_v39 = vld [vmem:[#allocation52_spill] sm:$0xff] }
 0x261   :  { %675 = vst [vmem:[%s2169_s3 + $0x18] sm:$0xff] %v547_v45 }
 0x262   :  { %676 = vst [vmem:[%s2169_s3 + $0x20] sm:$0xff] %v548_v5  ;;  %v2341_v5 = vld [vmem:[#allocation55_spill] sm:$0xff] }
 0x263   :  { %677 = vst [vmem:[%s2169_s3 + $0x28] sm:$0xff] %v549_v7  ;;  %v507_v0 = vpop.permute.xlu0 %506 }
 0x264   :  { %678 = vst [vmem:[%s2169_s3 + $0x30] sm:$0xff] %v550_v3  ;;  %v616_v1 = vmul.f32 %v507_v0, %v2322_v4  ;;  %v617_v35 = vmul.f32 %v507_v0, %v2323_v34  ;;  %v618_v50 = vmul.f32 %v507_v0, %v2324_v60  ;;  %v619_v61 = vmul.f32 %v507_v0, %v2325_v20  ;;  %v476_v48 = vpop.permute.xlu1 %475  ;;  %v2343_v3 = vld [vmem:[#allocation64_spill] sm:$0xff]  ;;  %v2352_v4 = vld [vmem:[#allocation53_spill] sm:$0xff]  ;;  %v2355_v20 = vld [vmem:[#allocation42_spill] sm:$0xff] }
 0x265   :  { %679 = vst [vmem:[%s2169_s3 + $0x38] sm:$0xff] %v551_v57  ;;  %v620_v53 = vmul.f32 %v507_v0, %v2326_v62  ;;  %v621_v33 = vmul.f32 %v507_v0, %v2327_v43  ;;  %v622_v18 = vmul.f32 %v507_v0, %v2328_v59  ;;  %v623_v41 = vmul.f32 %v507_v0, %v2329_v37  ;;  %v2350_v0 = vld [vmem:[#allocation46_spill] sm:$0xff]  ;;  %v2353_v34 = vld [vmem:[#allocation61_spill] sm:$0xff]  ;;  %v2354_v60 = vld [vmem:[#allocation40_spill] sm:$0xff] }
 0x266   :  { %712 = vst [vmem:[%s2169_s3 + $0x140] sm:$0xff] %v584_v30  ;;  %v576_v51 = vmul.f32 %v476_v48, %v2330_v42  ;;  %v577_v16 = vmul.f32 %v476_v48, %v2331_v63  ;;  %v578_v46 = vmul.f32 %v476_v48, %v2332_v23  ;;  %v579_v32 = vmul.f32 %v476_v48, %v2333_v56  ;;  %v2356_v62 = vld [vmem:[#allocation43_spill] sm:$0xff]  ;;  %v2361_v63 = vld [vmem:[#allocation66_spill] sm:$0xff] }
 0x267   :  { %713 = vst [vmem:[%s2169_s3 + $0x148] sm:$0xff] %v585_v28  ;;  %v580_v44 = vmul.f32 %v476_v48, %v2334_v40  ;;  %v581_v15 = vmul.f32 %v476_v48, %v2335_v58  ;;  %v582_v9 = vmul.f32 %v476_v48, %v2336_v54  ;;  %v583_v13 = vmul.f32 %v476_v48, %v2337_v19  ;;  %v2357_v43 = vld [vmem:[#allocation47_spill] sm:$0xff]  ;;  %v2358_v48 = vld [vmem:[#allocation54_spill] sm:$0xff]  ;;  %v831_v40 = vld [vmem:[%s2166_s0 + $0x290] sm:$0xff] }
 0x268   :  { %714 = vst [vmem:[%s2169_s3 + $0x150] sm:$0xff] %v586_v47  ;;  %v2360_v42 = vld [vmem:[#allocation63_spill] sm:$0xff]  ;;  %v829_v23 = vld [vmem:[%s2166_s0 + $0x280] sm:$0xff]  ;;  %v832_v58 = vld [vmem:[%s2166_s0 + $0x298] sm:$0xff] }
 0x269   :  { %715 = vst [vmem:[%s2169_s3 + $0x158] sm:$0xff] %v587_v2  ;;  %v830_v56 = vld [vmem:[%s2166_s0 + $0x288] sm:$0xff] }
 0x26a   :  { %716 = vst [vmem:[%s2169_s3 + $0x160] sm:$0xff] %v588_v25 }
 0x26b   :  { %717 = vst [vmem:[%s2169_s3 + $0x168] sm:$0xff] %v589_v24  ;;  %v494_v49 = vpop.permute.xlu2 %493 }
 0x26c   :  { %718 = vst [vmem:[%s2169_s3 + $0x170] sm:$0xff] %v590_v29  ;;  %v600_v17 = vmul.f32 %v494_v49, %v2338_v14  ;;  %v601_v31 = vmul.f32 %v494_v49, %v2339_v22  ;;  %v602_v45 = vmul.f32 %v494_v49, %v2340_v39  ;;  %v603_v7 = vmul.f32 %v494_v49, %v2341_v5  ;;  %v2351_v29 = vld [vmem:[#allocation51_spill] sm:$0xff]  ;;  %v835_v14 = vld [vmem:[%s2166_s0 + $0x2b0] sm:$0xff]  ;;  %v2362_v22 = vld [vmem:[#allocation14_spill] sm:$0xff] }
 0x26d   :  { %719 = vst [vmem:[%s2169_s3 + $0x178] sm:$0xff] %v591_v52  ;;  %v604_v8 = vmul.f32 %v494_v49, %v2342_v55  ;;  %v605_v12 = vmul.f32 %v494_v49, %v2343_v3  ;;  %v606_v30 = vmul.f32 %v494_v49, %v2344_v21  ;;  %v607_v28 = vmul.f32 %v494_v49, %v2345_v6  ;;  %v833_v49 = vld [vmem:[%s2166_s0 + $0x2a0] sm:$0xff]  ;;  %v837_v5 = vld [vmem:[%s2166_s0 + $0x208] sm:$0xff]  ;;  %v838_v55 = vld [vmem:[%s2166_s0 + $0x210] sm:$0xff] }
 0x26e   :  { %744 = vst [vmem:[%s2169_s3 + $0x240] sm:$0xff] %v616_v1  ;;  %v836_v39 = vld [vmem:[%s2166_s0 + $0x200] sm:$0xff]  ;;  %v839_v3 = vld [vmem:[%s2166_s0 + $0x218] sm:$0xff] }
 0x26f   :  { %745 = vst [vmem:[%s2169_s3 + $0x248] sm:$0xff] %v617_v35 }
 0x270   :  { %746 = vst [vmem:[%s2169_s3 + $0x250] sm:$0xff] %v618_v50 }
 0x271   :  { %747 = vst [vmem:[%s2169_s3 + $0x258] sm:$0xff] %v619_v61 }
 0x272   :  { %748 = vst [vmem:[%s2169_s3 + $0x260] sm:$0xff] %v620_v53 }
 0x273   :  { %749 = vst [vmem:[%s2169_s3 + $0x268] sm:$0xff] %v621_v33  ;;  %v537_v57 = vpop.permute.xlu0 %536 }
 0x274   :  { %750 = vst [vmem:[%s2169_s3 + $0x270] sm:$0xff] %v622_v18  ;;  %v656_v47 = vmul.f32 %v537_v57, %v2346_v26  ;;  %v657_v2 = vmul.f32 %v537_v57, %v2347_v11  ;;  %v658_v25 = vmul.f32 %v537_v57, %v2348_v38  ;;  %v659_v24 = vmul.f32 %v537_v57, %v2349_v10  ;;  %v488_v52 = vpop.permute.xlu1 %487  ;;  %v2359_v18 = vld [vmem:[#allocation59_spill] sm:$0xff]  ;;  %v842_v26 = vld [vmem:[%s2166_s0 + $0x230] sm:$0xff]  ;;  %v843_v11 = vld [vmem:[%s2166_s0 + $0x238] sm:$0xff] }
 0x275   :  { %751 = vst [vmem:[%s2169_s3 + $0x278] sm:$0xff] %v623_v41  ;;  %v660_v27 = vmul.f32 %v537_v57, %v2350_v0  ;;  %v661_v36 = vmul.f32 %v537_v57, %v2351_v29  ;;  %v662_v1 = vmul.f32 %v537_v57, %v2352_v4  ;;  %v663_v35 = vmul.f32 %v537_v57, %v2353_v34  ;;  %v840_v57 = vld [vmem:[%s2166_s0 + $0x220] sm:$0xff]  ;;  %v2364_v10 = vld [vmem:[#allocation24_spill] sm:$0xff]  ;;  %v2365_v0 = vld [vmem:[#allocation25_spill] sm:$0xff] }
 0x276   :  { %704 = vst [vmem:[%s2169_s3 + $0x100] sm:$0xff] %v576_v51  ;;  %v592_v50 = vmul.f32 %v488_v52, %v2354_v60  ;;  %v593_v61 = vmul.f32 %v488_v52, %v2355_v20  ;;  %v594_v53 = vmul.f32 %v488_v52, %v2356_v62  ;;  %v595_v33 = vmul.f32 %v488_v52, %v2357_v43  ;;  %v2363_v38 = vld [vmem:[#allocation22_spill] sm:$0xff]  ;;  %v2366_v29 = vld [vmem:[#allocation28_spill] sm:$0xff]  ;;  %v845_v43 = vld [vmem:[%s2166_s0 + $0x2c8] sm:$0xff] }
 0x277   :  { %705 = vst [vmem:[%s2169_s3 + $0x108] sm:$0xff] %v577_v16  ;;  %v596_v59 = vmul.f32 %v488_v52, %v2358_v48  ;;  %v597_v37 = vmul.f32 %v488_v52, %v2359_v18  ;;  %v598_v51 = vmul.f32 %v488_v52, %v2360_v42  ;;  %v599_v16 = vmul.f32 %v488_v52, %v2361_v63  ;;  %v2367_v52 = vld [vmem:[#allocation32_spill] sm:$0xff]  ;;  %v2369_v60 = vld [vmem:[#allocation38_spill] sm:$0xff]  ;;  %v847_v18 = vld [vmem:[%s2166_s0 + $0x2d8] sm:$0xff] }
 0x278   :  { %706 = vst [vmem:[%s2169_s3 + $0x110] sm:$0xff] %v578_v46  ;;  %v2370_v20 = vld [vmem:[#allocation44_spill] sm:$0xff]  ;;  %v844_v62 = vld [vmem:[%s2166_s0 + $0x2c0] sm:$0xff] }
 0x279   :  { %707 = vst [vmem:[%s2169_s3 + $0x118] sm:$0xff] %v579_v32  ;;  %v846_v48 = vld [vmem:[%s2166_s0 + $0x2d0] sm:$0xff] }
 0x27a   :  { %708 = vst [vmem:[%s2169_s3 + $0x120] sm:$0xff] %v580_v44 }
 0x27b   :  { %709 = vst [vmem:[%s2169_s3 + $0x128] sm:$0xff] %v581_v15  ;;  %v513_v41 = vpop.permute.xlu2 %512 }
 0x27c   :  { %710 = vst [vmem:[%s2169_s3 + $0x130] sm:$0xff] %v582_v9  ;;  %v624_v46 = vmul.f32 %v829_v23, %v513_v41  ;;  %v625_v32 = vmul.f32 %v830_v56, %v513_v41  ;;  %v626_v44 = vmul.f32 %v831_v40, %v513_v41  ;;  %v627_v15 = vmul.f32 %v832_v58, %v513_v41  ;;  %v834_v9 = vld [vmem:[%s2166_s0 + $0x2a8] sm:$0xff]  ;;  %v850_v23 = vld [vmem:[%s2166_s0 + $0x2f0] sm:$0xff]  ;;  %v851_v56 = vld [vmem:[%s2166_s0 + $0x2f8] sm:$0xff] }
 0x27d   :  { %711 = vst [vmem:[%s2169_s3 + $0x138] sm:$0xff] %v583_v13  ;;  %v628_v54 = vmul.f32 %v833_v49, %v513_v41  ;;  %v629_v19 = vmul.f32 %v834_v9, %v513_v41  ;;  %v2371_v40 = vld [vmem:[#allocation56_spill] sm:$0xff]  ;;  %v2372_v58 = vld [vmem:[#allocation57_spill] sm:$0xff]  ;;  %v2373_v49 = vld [vmem:[#allocation58_spill] sm:$0xff] }
 0x27e   :  { %728 = vst [vmem:[%s2169_s3 + $0x1c0] sm:$0xff] %v600_v17  ;;  %v630_v17 = vmul.f32 %v835_v14, %v513_v41  ;;  %v2374_v9 = vld [vmem:[#allocation62_spill] sm:$0xff] }
 0x27f   :  { %729 = vst [vmem:[%s2169_s3 + $0x1c8] sm:$0xff] %v601_v31  ;;  %v631_v31 = vmul.f32 %v513_v41, %v2362_v22  ;;  %v848_v41 = vld [vmem:[%s2166_s0 + $0x2e0] sm:$0xff] }
 0x280   :  { %730 = vst [vmem:[%s2169_s3 + $0x1d0] sm:$0xff] %v602_v45 }
 0x281   :  { %731 = vst [vmem:[%s2169_s3 + $0x1d8] sm:$0xff] %v603_v7 }
 0x282   :  { %732 = vst [vmem:[%s2169_s3 + $0x1e0] sm:$0xff] %v604_v8 }
 0x283   :  { %733 = vst [vmem:[%s2169_s3 + $0x1e8] sm:$0xff] %v605_v12 }
 0x284   :  { %734 = vst [vmem:[%s2169_s3 + $0x1f0] sm:$0xff] %v606_v30  ;;  %v501_v13 = vpop.permute.xlu1 %500  ;;  %v841_v30 = vld [vmem:[%s2166_s0 + $0x228] sm:$0xff] }
 0x285   :  { %735 = vst [vmem:[%s2169_s3 + $0x1f8] sm:$0xff] %v607_v28  ;;  %v608_v45 = vmul.f32 %v836_v39, %v501_v13  ;;  %v609_v7 = vmul.f32 %v837_v5, %v501_v13  ;;  %v610_v8 = vmul.f32 %v838_v55, %v501_v13  ;;  %v611_v12 = vmul.f32 %v839_v3, %v501_v13  ;;  %v2377_v39 = vld [vmem:[#allocation70_spill] sm:$0xff]  ;;  %v2378_v5 = vld [vmem:[#allocation71_spill] sm:$0xff] }
 0x286   :  { %784 = vst [vmem:[%s2169_s3 + $0x380] sm:$0xff] %v656_v47  ;;  %v612_v21 = vmul.f32 %v840_v57, %v501_v13  ;;  %v613_v6 = vmul.f32 %v841_v30, %v501_v13  ;;  %v614_v47 = vmul.f32 %v842_v26, %v501_v13  ;;  %v852_v55 = vld [vmem:[%s2166_s0 + $0x340] sm:$0xff]  ;;  %v853_v3 = vld [vmem:[%s2166_s0 + $0x348] sm:$0xff]  ;;  %v854_v57 = vld [vmem:[%s2166_s0 + $0x350] sm:$0xff] }
 0x287   :  { %785 = vst [vmem:[%s2169_s3 + $0x388] sm:$0xff] %v657_v2  ;;  %v615_v2 = vmul.f32 %v843_v11, %v501_v13  ;;  %v2375_v13 = vld [vmem:[#allocation65_spill] sm:$0xff] }
 0x288   :  { %786 = vst [vmem:[%s2169_s3 + $0x390] sm:$0xff] %v658_v25  ;;  %v855_v30 = vld [vmem:[%s2166_s0 + $0x358] sm:$0xff] }
 0x289   :  { %787 = vst [vmem:[%s2169_s3 + $0x398] sm:$0xff] %v659_v24 }
 0x28a   :  { %788 = vst [vmem:[%s2169_s3 + $0x3a0] sm:$0xff] %v660_v27 }
 0x28b   :  { %789 = vst [vmem:[%s2169_s3 + $0x3a8] sm:$0xff] %v661_v36  ;;  %v525_v28 = vpop.permute.xlu2 %524 }
 0x28c   :  { %790 = vst [vmem:[%s2169_s3 + $0x3b0] sm:$0xff] %v662_v1  ;;  %v640_v25 = vmul.f32 %v525_v28, %v2363_v38  ;;  %v641_v24 = vmul.f32 %v525_v28, %v2364_v10  ;;  %v642_v27 = vmul.f32 %v525_v28, %v2365_v0  ;;  %v643_v36 = vmul.f32 %v525_v28, %v2366_v29  ;;  %v2368_v1 = vld [vmem:[#allocation37_spill] sm:$0xff] }
 0x28d   :  { %791 = vst [vmem:[%s2169_s3 + $0x3b8] sm:$0xff] %v663_v35  ;;  %v644_v4 = vmul.f32 %v525_v28, %v2367_v52  ;;  %v645_v34 = vmul.f32 %v525_v28, %v2368_v1 }
 0x28e   :  { %720 = vst [vmem:[%s2169_s3 + $0x180] sm:$0xff] %v592_v50  ;;  %v646_v50 = vmul.f32 %v525_v28, %v2369_v60 }
 0x28f   :  { %721 = vst [vmem:[%s2169_s3 + $0x188] sm:$0xff] %v593_v61  ;;  %v647_v61 = vmul.f32 %v525_v28, %v2370_v20  ;;  %v856_v28 = vld [vmem:[%s2166_s0 + $0x360] sm:$0xff] }
 0x290   :  { %722 = vst [vmem:[%s2169_s3 + $0x190] sm:$0xff] %v594_v53 }
 0x291   :  { %723 = vst [vmem:[%s2169_s3 + $0x198] sm:$0xff] %v595_v33 }
 0x292   :  { %724 = vst [vmem:[%s2169_s3 + $0x1a0] sm:$0xff] %v596_v59 }
 0x293   :  { %725 = vst [vmem:[%s2169_s3 + $0x1a8] sm:$0xff] %v597_v37 }
 0x294   :  { %726 = vst [vmem:[%s2169_s3 + $0x1b0] sm:$0xff] %v598_v51  ;;  %v519_v35 = vpop.permute.xlu1 %518  ;;  %v849_v51 = vld [vmem:[%s2166_s0 + $0x2e8] sm:$0xff] }
 0x295   :  { %727 = vst [vmem:[%s2169_s3 + $0x1b8] sm:$0xff] %v599_v16  ;;  %v632_v53 = vmul.f32 %v844_v62, %v519_v35  ;;  %v633_v33 = vmul.f32 %v845_v43, %v519_v35  ;;  %v634_v59 = vmul.f32 %v846_v48, %v519_v35  ;;  %v635_v37 = vmul.f32 %v847_v18, %v519_v35 }
 0x296   :  { %752 = vst [vmem:[%s2169_s3 + $0x280] sm:$0xff] %v624_v46  ;;  %v636_v42 = vmul.f32 %v848_v41, %v519_v35  ;;  %v637_v63 = vmul.f32 %v849_v51, %v519_v35  ;;  %v638_v46 = vmul.f32 %v850_v23, %v519_v35 }
 0x297   :  { %753 = vst [vmem:[%s2169_s3 + $0x288] sm:$0xff] %v625_v32  ;;  %v639_v32 = vmul.f32 %v851_v56, %v519_v35 }
 0x298   :  { %754 = vst [vmem:[%s2169_s3 + $0x290] sm:$0xff] %v626_v44 }
 0x299   :  { %755 = vst [vmem:[%s2169_s3 + $0x298] sm:$0xff] %v627_v15 }
 0x29a   :  { %756 = vst [vmem:[%s2169_s3 + $0x2a0] sm:$0xff] %v628_v54 }
 0x29b   :  { %757 = vst [vmem:[%s2169_s3 + $0x2a8] sm:$0xff] %v629_v19  ;;  %v543_v16 = vpop.permute.xlu2 %542 }
 0x29c   :  { %758 = vst [vmem:[%s2169_s3 + $0x2b0] sm:$0xff] %v630_v17  ;;  %v664_v44 = vmul.f32 %v543_v16, %v2371_v40  ;;  %v665_v15 = vmul.f32 %v543_v16, %v2372_v58  ;;  %v666_v54 = vmul.f32 %v543_v16, %v2373_v49  ;;  %v667_v19 = vmul.f32 %v543_v16, %v2374_v9  ;;  %v2376_v17 = vld [vmem:[#allocation68_spill] sm:$0xff] }
 0x29d   :  { %759 = vst [vmem:[%s2169_s3 + $0x2b8] sm:$0xff] %v631_v31  ;;  %v668_v14 = vmul.f32 %v543_v16, %v2375_v13  ;;  %v669_v22 = vmul.f32 %v543_v16, %v2376_v17 }
 0x29e   :  { %736 = vst [vmem:[%s2169_s3 + $0x200] sm:$0xff] %v608_v45  ;;  %v670_v45 = vmul.f32 %v543_v16, %v2377_v39 }
 0x29f   :  { %737 = vst [vmem:[%s2169_s3 + $0x208] sm:$0xff] %v609_v7  ;;  %v671_v7 = vmul.f32 %v543_v16, %v2378_v5 }
 0x2a0   :  { %738 = vst [vmem:[%s2169_s3 + $0x210] sm:$0xff] %v610_v8 }
 0x2a1   :  { %739 = vst [vmem:[%s2169_s3 + $0x218] sm:$0xff] %v611_v12 }
 0x2a2   :  { %740 = vst [vmem:[%s2169_s3 + $0x220] sm:$0xff] %v612_v21 }
 0x2a3   :  { %741 = vst [vmem:[%s2169_s3 + $0x228] sm:$0xff] %v613_v6 }
 0x2a4   :  { %742 = vst [vmem:[%s2169_s3 + $0x230] sm:$0xff] %v614_v47  ;;  %v531_v31 = vpop.permute.xlu1 %530  ;;  %v2379_v47 = vld [vmem:[#allocation41_spill] sm:$0xff] }
 0x2a5   :  { %743 = vst [vmem:[%s2169_s3 + $0x238] sm:$0xff] %v615_v2  ;;  %v648_v8 = vmul.f32 %v852_v55, %v531_v31  ;;  %v649_v12 = vmul.f32 %v853_v3, %v531_v31  ;;  %v650_v21 = vmul.f32 %v854_v57, %v531_v31  ;;  %v651_v6 = vmul.f32 %v855_v30, %v531_v31  ;;  %v2380_v2 = vld [vmem:[#allocation45_spill] sm:$0xff] }
 0x2a6   :  { %768 = vst [vmem:[%s2169_s3 + $0x300] sm:$0xff] %v640_v25  ;;  %v652_v26 = vmul.f32 %v856_v28, %v531_v31  ;;  %v653_v11 = vmul.f32 %v531_v31, %v2379_v47  ;;  %v654_v38 = vmul.f32 %v531_v31, %v2380_v2  ;;  %v2381_v25 = vld [vmem:[#allocation50_spill] sm:$0xff] }
 0x2a7   :  { %769 = vst [vmem:[%s2169_s3 + $0x308] sm:$0xff] %v641_v24  ;;  %v655_v10 = vmul.f32 %v531_v31, %v2381_v25 }
 0x2a8   :  { %770 = vst [vmem:[%s2169_s3 + $0x310] sm:$0xff] %v642_v27 }
 0x2a9   :  { %771 = vst [vmem:[%s2169_s3 + $0x318] sm:$0xff] %v643_v36 }
 0x2aa   :  { %772 = vst [vmem:[%s2169_s3 + $0x320] sm:$0xff] %v644_v4 }
 0x2ab   :  { %773 = vst [vmem:[%s2169_s3 + $0x328] sm:$0xff] %v645_v34 }
 0x2ac   :  { %774 = vst [vmem:[%s2169_s3 + $0x330] sm:$0xff] %v646_v50 }
 0x2ad   :  { %775 = vst [vmem:[%s2169_s3 + $0x338] sm:$0xff] %v647_v61 }
 0x2ae   :  { %760 = vst [vmem:[%s2169_s3 + $0x2c0] sm:$0xff] %v632_v53 }
 0x2af   :  { %761 = vst [vmem:[%s2169_s3 + $0x2c8] sm:$0xff] %v633_v33 }
 0x2b0   :  { %762 = vst [vmem:[%s2169_s3 + $0x2d0] sm:$0xff] %v634_v59 }
 0x2b1   :  { %763 = vst [vmem:[%s2169_s3 + $0x2d8] sm:$0xff] %v635_v37 }
 0x2b2   :  { %764 = vst [vmem:[%s2169_s3 + $0x2e0] sm:$0xff] %v636_v42 }
 0x2b3   :  { %765 = vst [vmem:[%s2169_s3 + $0x2e8] sm:$0xff] %v637_v63 }
 0x2b4   :  { %766 = vst [vmem:[%s2169_s3 + $0x2f0] sm:$0xff] %v638_v46 }
 0x2b5   :  { %767 = vst [vmem:[%s2169_s3 + $0x2f8] sm:$0xff] %v639_v32 }
 0x2b6   :  { %792 = vst [vmem:[%s2169_s3 + $0x3c0] sm:$0xff] %v664_v44 }
 0x2b7   :  { %793 = vst [vmem:[%s2169_s3 + $0x3c8] sm:$0xff] %v665_v15 }
 0x2b8   :  { %794 = vst [vmem:[%s2169_s3 + $0x3d0] sm:$0xff] %v666_v54 }
 0x2b9   :  { %795 = vst [vmem:[%s2169_s3 + $0x3d8] sm:$0xff] %v667_v19 }
 0x2ba   :  { %796 = vst [vmem:[%s2169_s3 + $0x3e0] sm:$0xff] %v668_v14 }
 0x2bb   :  { %797 = vst [vmem:[%s2169_s3 + $0x3e8] sm:$0xff] %v669_v22 }
 0x2bc   :  { %798 = vst [vmem:[%s2169_s3 + $0x3f0] sm:$0xff] %v670_v45 }
 0x2bd   :  { %799 = vst [vmem:[%s2169_s3 + $0x3f8] sm:$0xff] %v671_v7 }
 0x2be   :  { %776 = vst [vmem:[%s2169_s3 + $0x340] sm:$0xff] %v648_v8 }
 0x2bf   :  { %777 = vst [vmem:[%s2169_s3 + $0x348] sm:$0xff] %v649_v12 }
 0x2c0   :  { %778 = vst [vmem:[%s2169_s3 + $0x350] sm:$0xff] %v650_v21 }
 0x2c1   :  { %779 = vst [vmem:[%s2169_s3 + $0x358] sm:$0xff] %v651_v6 }
 0x2c2   :  { %780 = vst [vmem:[%s2169_s3 + $0x360] sm:$0xff] %v652_v26 }
 0x2c3   :  { %781 = vst [vmem:[%s2169_s3 + $0x368] sm:$0xff] %v653_v11 }
 0x2c4   :  { %782 = vst [vmem:[%s2169_s3 + $0x370] sm:$0xff] %v654_v38 }
 0x2c5   :  { %783 = vst [vmem:[%s2169_s3 + $0x378] sm:$0xff] %v655_v10 }

</bundles_post_ra>
